<compile_context>
chip_gen: v5e
topology: v5e:2x2
jax: 0.10.0
libtpu: 0.0.40
codegen_flags: <defaults>
</compile_context>

<pallas_src>
import functools

import jax
import jax.numpy as jnp
from jax.experimental import pallas as pl
from jax.experimental.pallas import tpu as pltpu


LANE = 128


def _round_up(x, m):
    return ((x + m - 1) // m) * m


def _lddt_head_kernel(s_ref, g_ref, be_ref,
                      w1_ref, b1_ref, w2_ref, b2_ref, w3_ref, b3_ref,
                      o_ref):
    # --- LayerNorm over the feature (lane) axis, all stats in f32 ---
    x = s_ref[...].astype(jnp.float32)
    mean = jnp.mean(x, axis=-1, keepdims=True)
    cen = x - mean
    var = jnp.mean(cen * cen, axis=-1, keepdims=True)
    x = cen * jax.lax.rsqrt(var + 1e-5)
    x = x * g_ref[...].astype(jnp.float32) + be_ref[...].astype(jnp.float32)

    # MXU operand dtype follows the stored weight dtype (bf16 weights -> bf16
    # MXU feeds with f32 accumulation; f32 weights -> full f32 matmuls).
    mm_dtype = w1_ref.dtype

    # --- Linear 1 + ReLU ---
    h = jnp.dot(x.astype(mm_dtype), w1_ref[...],
                preferred_element_type=jnp.float32)
    h = jnp.maximum(h + b1_ref[...].astype(jnp.float32), 0.0)

    # --- Linear 2 + ReLU ---
    h = jnp.dot(h.astype(mm_dtype), w2_ref[...],
                preferred_element_type=jnp.float32)
    h = jnp.maximum(h + b2_ref[...].astype(jnp.float32), 0.0)

    # --- Linear 3 (logits over padded no_bins, lane-dense store) ---
    out = jnp.dot(h.astype(mm_dtype), w3_ref[...],
                  preferred_element_type=jnp.float32)
    out = out + b3_ref[...].astype(jnp.float32)
    o_ref[...] = out.astype(o_ref.dtype)


@functools.partial(jax.jit, static_argnames=("tile_m",))
def per_residue_lddt_ca_predictor(s, params, *, tile_m=1024):
    """s: [..., c_in]  ->  logits: [..., no_bins]

    tile_m: row-tile size (multiple of 8).  1024 rows of f32 c_in=384 input is
    ~1.5 MiB per buffer, so double-buffered input+output plus resident weights
    stay far under the 32 MiB scoped / 64 MiB physical VMEM on v7x (and under
    the 16 MiB default on v5e).
    """
    assert tile_m >= 8 and tile_m % 8 == 0, "tile_m must be a multiple of 8"
    gamma, beta, w1, b1, w2, b2, w3, b3 = params
    c_in = s.shape[-1]
    c_hidden = w1.shape[-1]
    no_bins = w3.shape[-1]
    lead = s.shape[:-1]

    # ---- lane-pad hidden/out feature dims to multiples of 128 (zero pad) ----
    ch_pad = _round_up(c_hidden, LANE)
    nb_pad = _round_up(no_bins, LANE)
    dh = ch_pad - c_hidden
    dn = nb_pad - no_bins
    gamma2 = gamma.reshape(1, c_in)
    beta2 = beta.reshape(1, c_in)
    w1p = jnp.pad(w1, ((0, 0), (0, dh))) if dh else w1
    b1p = jnp.pad(b1.reshape(1, -1), ((0, 0), (0, dh))) if dh else b1.reshape(1, -1)
    w2p = jnp.pad(w2, ((0, dh), (0, dh))) if dh else w2
    b2p = jnp.pad(b2.reshape(1, -1), ((0, 0), (0, dh))) if dh else b2.reshape(1, -1)
    w3p = jnp.pad(w3, ((0, dh), (0, dn))) if (dh or dn) else w3
    b3p = jnp.pad(b3.reshape(1, -1), ((0, 0), (0, dn))) if dn else b3.reshape(1, -1)

    # ---- flatten leading dims to rows; pad rows to a multiple of the tile ----
    s2d = s.reshape(-1, c_in)
    n = s2d.shape[0]
    n8 = _round_up(max(n, 8), 8)
    tile = min(tile_m, n8)             # multiple of 8 by construction
    n_pad = _round_up(n, tile)         # multiple of tile
    if n_pad != n:
        s2d = jnp.pad(s2d, ((0, n_pad - n), (0, 0)))
    grid = n_pad // tile

    row_spec_in = pl.BlockSpec((tile, c_in), lambda i: (i, 0))
    row_spec_out = pl.BlockSpec((tile, nb_pad), lambda i: (i, 0))
    # Full-array blocks with constant index maps: weights/biases stay
    # VMEM-resident across all grid steps.
    const = lambda shape: pl.BlockSpec(shape, lambda i: tuple(0 for _ in shape))

    out2d = pl.pallas_call(
        _lddt_head_kernel,
        out_shape=jax.ShapeDtypeStruct((n_pad, nb_pad), s.dtype),
        grid_spec=pltpu.PrefetchScalarGridSpec(
            num_scalar_prefetch=0,
            grid=(grid,),
            in_specs=[
                row_spec_in,
                const(gamma2.shape), const(beta2.shape),
                const(w1p.shape), const(b1p.shape),
                const(w2p.shape), const(b2p.shape),
                const(w3p.shape), const(b3p.shape),
            ],
            out_specs=row_spec_out,
        ),
        compiler_params=pltpu.CompilerParams(
            dimension_semantics=("parallel",),
            vmem_limit_bytes=32 * 1024 * 1024,
        ),
    )(s2d, gamma2, beta2, w1p, b1p, w2p, b2p, w3p, b3p)

    out2d = out2d[:n, :no_bins]
    return out2d.reshape(*lead, no_bins)


def make_params(key, c_in, c_hidden, no_bins, dtype=jnp.float32):
    """Deterministic synthetic parameters (not a checkpoint load).

    Weights stored [in, out] (transposed vs. PyTorch nn.Linear); biases 1-D.
    """
    ks = jax.random.split(key, 8)
    gamma = (1.0 + 0.1 * jax.random.normal(ks[0], (c_in,))).astype(dtype)
    beta = (0.1 * jax.random.normal(ks[1], (c_in,))).astype(dtype)
    w1 = (jax.random.normal(ks[2], (c_in, c_hidden)) * (2.0 / c_in) ** 0.5).astype(dtype)
    b1 = (0.05 * jax.random.normal(ks[3], (c_hidden,))).astype(dtype)
    w2 = (jax.random.normal(ks[4], (c_hidden, c_hidden)) * (2.0 / c_hidden) ** 0.5).astype(dtype)
    b2 = (0.05 * jax.random.normal(ks[5], (c_hidden,))).astype(dtype)
    # init='final' in OpenFold is zeros; use tiny values so the test is non-trivial.
    w3 = (0.02 * jax.random.normal(ks[6], (c_hidden, no_bins))).astype(dtype)
    b3 = (0.02 * jax.random.normal(ks[7], (no_bins,))).astype(dtype)
    return (gamma, beta, w1, b1, w2, b2, w3, b3)


def _reference(s, params):
    gamma, beta, w1, b1, w2, b2, w3, b3 = params
    x = s.astype(jnp.float32)
    mean = jnp.mean(x, axis=-1, keepdims=True)
    var = jnp.mean((x - mean) ** 2, axis=-1, keepdims=True)
    x = (x - mean) * jax.lax.rsqrt(var + 1e-5)
    x = x * gamma.astype(jnp.float32) + beta.astype(jnp.float32)
    x = jnp.maximum(x @ w1.astype(jnp.float32) + b1.astype(jnp.float32), 0.0)
    x = jnp.maximum(x @ w2.astype(jnp.float32) + b2.astype(jnp.float32), 0.0)
    return (x @ w3.astype(jnp.float32) + b3.astype(jnp.float32)).astype(s.dtype)


if __name__ == "__main__":
    key = jax.random.PRNGKey(0)
    c_in, c_hidden, no_bins = 32, 16, 8
    k_s, k_s2, k_p = jax.random.split(key, 3)
    params = make_params(k_p, c_in, c_hidden, no_bins, dtype=jnp.float32)

    # --- Test 1: evenly tiled rows (batch=2, seq=8, tile_m=8 -> 2 grid steps) ---
    s = jax.random.normal(k_s, (2, 8, c_in), jnp.float32)
    out = per_residue_lddt_ca_predictor(s, params, tile_m=8)
    out = jax.block_until_ready(out)
    ref = _reference(s, params)
    assert out.shape == (2, 8, no_bins), out.shape
    assert jnp.allclose(out, ref, atol=1e-4, rtol=1e-4), float(
        jnp.max(jnp.abs(out - ref)))

    # --- Test 2: row count not a multiple of the tile (batch=2, seq=9) ---
    s2 = jax.random.normal(k_s2, (2, 9, c_in), jnp.float32)
    out2 = per_residue_lddt_ca_predictor(s2, params, tile_m=8)
    out2 = jax.block_until_ready(out2)
    ref2 = _reference(s2, params)
    assert out2.shape == (2, 9, no_bins), out2.shape
    assert jnp.allclose(out2, ref2, atol=1e-4, rtol=1e-4), float(
        jnp.max(jnp.abs(out2 - ref2)))

    # --- Test 3: bf16 weights/activations smoke test (bf16 MXU path) ---
    params_bf16 = jax.tree_util.tree_map(
        lambda a: a.astype(jnp.bfloat16), params)
    out3 = per_residue_lddt_ca_predictor(
        s.astype(jnp.bfloat16), params_bf16, tile_m=8)
    out3 = jax.block_until_ready(out3)
    assert out3.shape == (2, 8, no_bins), out3.shape
    assert bool(jnp.all(jnp.isfinite(out3.astype(jnp.float32))))

    print("KERNEL_OK")
</pallas_src>

<mosaic_0001>
module attributes {stable_mosaic.version = 11 : i64} {
  func.func @_lddt_head_kernel(%arg0: i32, %arg1: memref<8x32xf32, #tpu.memory_space<vmem>>, %arg2: memref<1x32xf32, #tpu.memory_space<vmem>>, %arg3: memref<1x32xf32, #tpu.memory_space<vmem>>, %arg4: memref<32x128xf32, #tpu.memory_space<vmem>>, %arg5: memref<1x128xf32, #tpu.memory_space<vmem>>, %arg6: memref<128x128xf32, #tpu.memory_space<vmem>>, %arg7: memref<1x128xf32, #tpu.memory_space<vmem>>, %arg8: memref<128x128xf32, #tpu.memory_space<vmem>>, %arg9: memref<1x128xf32, #tpu.memory_space<vmem>>, %arg10: memref<8x128xf32, #tpu.memory_space<vmem>>) attributes {dimension_semantics = [#tpu.dimension_semantics<parallel>], iteration_bounds = array<i64: 2>, scalar_prefetch = 0 : i64, scratch_operands = 0 : i64, tpu.core_type = #tpu.core_type<tc>, window_params = [{transform_indices = @transform_0, window_bounds = array<i64: 8, 32>}, {pipeline_mode = #tpu.pipeline_mode<synchronous>, transform_indices = @transform_1, window_bounds = array<i64: 1, 32>}, {pipeline_mode = #tpu.pipeline_mode<synchronous>, transform_indices = @transform_2, window_bounds = array<i64: 1, 32>}, {pipeline_mode = #tpu.pipeline_mode<synchronous>, transform_indices = @transform_3, window_bounds = array<i64: 32, 128>}, {pipeline_mode = #tpu.pipeline_mode<synchronous>, transform_indices = @transform_4, window_bounds = array<i64: 1, 128>}, {pipeline_mode = #tpu.pipeline_mode<synchronous>, transform_indices = @transform_5, window_bounds = array<i64: 128, 128>}, {pipeline_mode = #tpu.pipeline_mode<synchronous>, transform_indices = @transform_6, window_bounds = array<i64: 1, 128>}, {pipeline_mode = #tpu.pipeline_mode<synchronous>, transform_indices = @transform_7, window_bounds = array<i64: 128, 128>}, {pipeline_mode = #tpu.pipeline_mode<synchronous>, transform_indices = @transform_8, window_bounds = array<i64: 1, 128>}, {transform_indices = @transform_9, window_bounds = array<i64: 8, 128>}]} {
    %c0 = arith.constant 0 : index
    %c0_0 = arith.constant 0 : index
    %0 = vector.load %arg1[%c0, %c0_0] : memref<8x32xf32, #tpu.memory_space<vmem>>, vector<8x32xf32>
    %cst = arith.constant dense<0.000000e+00> : vector<8xf32>
    %1 = vector.multi_reduction <add>, %0, %cst [1] : vector<8x32xf32> to vector<8xf32>
    %2 = vector.shape_cast %1 : vector<8xf32> to vector<8x1xf32>
    %cst_1 = arith.constant 3.200000e+01 : f32
    %3 = vector.broadcast %cst_1 : f32 to vector<8x1xf32>
    %4 = arith.divf %2, %3 : vector<8x1xf32>
    %5 = vector.broadcast %4 : vector<8x1xf32> to vector<8x32xf32>
    %6 = arith.subf %0, %5 : vector<8x32xf32>
    %7 = arith.mulf %6, %6 : vector<8x32xf32>
    %cst_2 = arith.constant dense<0.000000e+00> : vector<8xf32>
    %8 = vector.multi_reduction <add>, %7, %cst_2 [1] : vector<8x32xf32> to vector<8xf32>
    %9 = vector.shape_cast %8 : vector<8xf32> to vector<8x1xf32>
    %cst_3 = arith.constant 3.200000e+01 : f32
    %10 = vector.broadcast %cst_3 : f32 to vector<8x1xf32>
    %11 = arith.divf %9, %10 : vector<8x1xf32>
    %cst_4 = arith.constant 9.99999974E-6 : f32
    %12 = vector.broadcast %cst_4 : f32 to vector<8x1xf32>
    %13 = arith.addf %11, %12 : vector<8x1xf32>
    %14 = math.rsqrt %13 : vector<8x1xf32>
    %15 = vector.broadcast %14 : vector<8x1xf32> to vector<8x32xf32>
    %16 = arith.mulf %6, %15 : vector<8x32xf32>
    %c0_5 = arith.constant 0 : index
    %c0_6 = arith.constant 0 : index
    %17 = vector.load %arg2[%c0_5, %c0_6] : memref<1x32xf32, #tpu.memory_space<vmem>>, vector<1x32xf32>
    %18 = vector.broadcast %17 : vector<1x32xf32> to vector<8x32xf32>
    %19 = arith.mulf %16, %18 : vector<8x32xf32>
    %c0_7 = arith.constant 0 : index
    %c0_8 = arith.constant 0 : index
    %20 = vector.load %arg3[%c0_7, %c0_8] : memref<1x32xf32, #tpu.memory_space<vmem>>, vector<1x32xf32>
    %21 = vector.broadcast %20 : vector<1x32xf32> to vector<8x32xf32>
    %22 = arith.addf %19, %21 : vector<8x32xf32>
    %c0_9 = arith.constant 0 : index
    %c0_10 = arith.constant 0 : index
    %23 = vector.load %arg4[%c0_9, %c0_10] : memref<32x128xf32, #tpu.memory_space<vmem>>, vector<32x128xf32>
    %cst_11 = arith.constant dense<0.000000e+00> : vector<8x128xf32>
    %24 = tpu.matmul %22, %23, %cst_11 {dimension_numbers = #tpu.dot_dimension_numbers<[1], [0], [0], [1], [0, 0, 1, 1], [], []>} : vector<8x32xf32>, vector<32x128xf32>, vector<8x128xf32> -> vector<8x128xf32>
    %c0_12 = arith.constant 0 : index
    %c0_13 = arith.constant 0 : index
    %25 = vector.load %arg5[%c0_12, %c0_13] : memref<1x128xf32, #tpu.memory_space<vmem>>, vector<1x128xf32>
    %26 = vector.broadcast %25 : vector<1x128xf32> to vector<8x128xf32>
    %27 = arith.addf %24, %26 : vector<8x128xf32>
    %cst_14 = arith.constant 0.000000e+00 : f32
    %28 = vector.broadcast %cst_14 : f32 to vector<8x128xf32>
    %29 = arith.maximumf %27, %28 : vector<8x128xf32>
    %c0_15 = arith.constant 0 : index
    %c0_16 = arith.constant 0 : index
    %30 = vector.load %arg6[%c0_15, %c0_16] : memref<128x128xf32, #tpu.memory_space<vmem>>, vector<128x128xf32>
    %cst_17 = arith.constant dense<0.000000e+00> : vector<8x128xf32>
    %31 = tpu.matmul %29, %30, %cst_17 {dimension_numbers = #tpu.dot_dimension_numbers<[1], [0], [0], [1], [0, 0, 1, 1], [], []>} : vector<8x128xf32>, vector<128x128xf32>, vector<8x128xf32> -> vector<8x128xf32>
    %c0_18 = arith.constant 0 : index
    %c0_19 = arith.constant 0 : index
    %32 = vector.load %arg7[%c0_18, %c0_19] : memref<1x128xf32, #tpu.memory_space<vmem>>, vector<1x128xf32>
    %33 = vector.broadcast %32 : vector<1x128xf32> to vector<8x128xf32>
    %34 = arith.addf %31, %33 : vector<8x128xf32>
    %cst_20 = arith.constant 0.000000e+00 : f32
    %35 = vector.broadcast %cst_20 : f32 to vector<8x128xf32>
    %36 = arith.maximumf %34, %35 : vector<8x128xf32>
    %c0_21 = arith.constant 0 : index
    %c0_22 = arith.constant 0 : index
    %37 = vector.load %arg8[%c0_21, %c0_22] : memref<128x128xf32, #tpu.memory_space<vmem>>, vector<128x128xf32>
    %cst_23 = arith.constant dense<0.000000e+00> : vector<8x128xf32>
    %38 = tpu.matmul %36, %37, %cst_23 {dimension_numbers = #tpu.dot_dimension_numbers<[1], [0], [0], [1], [0, 0, 1, 1], [], []>} : vector<8x128xf32>, vector<128x128xf32>, vector<8x128xf32> -> vector<8x128xf32>
    %c0_24 = arith.constant 0 : index
    %c0_25 = arith.constant 0 : index
    %39 = vector.load %arg9[%c0_24, %c0_25] : memref<1x128xf32, #tpu.memory_space<vmem>>, vector<1x128xf32>
    %40 = vector.broadcast %39 : vector<1x128xf32> to vector<8x128xf32>
    %41 = arith.addf %38, %40 : vector<8x128xf32>
    %c0_26 = arith.constant 0 : index
    %c0_27 = arith.constant 0 : index
    %42 = vector.load %arg10[%c0_26, %c0_27] : memref<8x128xf32, #tpu.memory_space<vmem>>, vector<8x128xf32>
    tpu.vector_store %arg10[%c0_26, %c0_27], %41 {strides = array<i32>} : memref<8x128xf32, #tpu.memory_space<vmem>>, vector<8x128xf32>,
    return
  }
  func.func @transform_0(%arg0: i32) -> (i32, i32) {
    %c0_i32 = arith.constant 0 : i32
    %c0_i32_0 = arith.constant 0 : i32
    return %arg0, %c0_i32 : i32, i32
  }
  func.func @transform_1(%arg0: i32) -> (i32, i32) {
    %c0_i32 = arith.constant 0 : i32
    %c0_i32_0 = arith.constant 0 : i32
    %c0_i32_1 = arith.constant 0 : i32
    return %c0_i32, %c0_i32_0 : i32, i32
  }
  func.func @transform_2(%arg0: i32) -> (i32, i32) {
    %c0_i32 = arith.constant 0 : i32
    %c0_i32_0 = arith.constant 0 : i32
    %c0_i32_1 = arith.constant 0 : i32
    return %c0_i32, %c0_i32_0 : i32, i32
  }
  func.func @transform_3(%arg0: i32) -> (i32, i32) {
    %c0_i32 = arith.constant 0 : i32
    %c0_i32_0 = arith.constant 0 : i32
    %c0_i32_1 = arith.constant 0 : i32
    return %c0_i32, %c0_i32_0 : i32, i32
  }
  func.func @transform_4(%arg0: i32) -> (i32, i32) {
    %c0_i32 = arith.constant 0 : i32
    %c0_i32_0 = arith.constant 0 : i32
    %c0_i32_1 = arith.constant 0 : i32
    return %c0_i32, %c0_i32_0 : i32, i32
  }
  func.func @transform_5(%arg0: i32) -> (i32, i32) {
    %c0_i32 = arith.constant 0 : i32
    %c0_i32_0 = arith.constant 0 : i32
    %c0_i32_1 = arith.constant 0 : i32
    return %c0_i32, %c0_i32_0 : i32, i32
  }
  func.func @transform_6(%arg0: i32) -> (i32, i32) {
    %c0_i32 = arith.constant 0 : i32
    %c0_i32_0 = arith.constant 0 : i32
    %c0_i32_1 = arith.constant 0 : i32
    return %c0_i32, %c0_i32_0 : i32, i32
  }
  func.func @transform_7(%arg0: i32) -> (i32, i32) {
    %c0_i32 = arith.constant 0 : i32
    %c0_i32_0 = arith.constant 0 : i32
    %c0_i32_1 = arith.constant 0 : i32
    return %c0_i32, %c0_i32_0 : i32, i32
  }
  func.func @transform_8(%arg0: i32) -> (i32, i32) {
    %c0_i32 = arith.constant 0 : i32
    %c0_i32_0 = arith.constant 0 : i32
    %c0_i32_1 = arith.constant 0 : i32
    return %c0_i32, %c0_i32_0 : i32, i32
  }
  func.func @transform_9(%arg0: i32) -> (i32, i32) {
    %c0_i32 = arith.constant 0 : i32
    %c0_i32_0 = arith.constant 0 : i32
    return %arg0, %c0_i32 : i32, i32
  }
}

</mosaic_0001>

<bundles_post_ra>
// kernel: per_residue_lddt_ca_predictor.1
= control target key start
LH: loop header
LB: loop body
LE: loop exit
PB: predicated region body
PF: predicated region fallthrough
CT: control target
= control target key end

     0   :  { %s623_s30 = smov 0   ;;  %s773_s0 = inlined_call_operand.vmem [shape: f32[16,32], index: 0, kind: input, shape index: {}]   ;;  %s774_s1 = inlined_call_operand.vmem [shape: f32[1,32], index: 1, kind: input, shape index: {}]   ;;  %s775_s2 = inlined_call_operand.vmem [shape: f32[1,32], index: 2, kind: input, shape index: {}]   ;;  %s776_s3 = inlined_call_operand.vmem [shape: f32[32,128], index: 3, kind: input, shape index: {}]   ;;  %s777_s4 = inlined_call_operand.vmem [shape: f32[1,128], index: 4, kind: input, shape index: {}]   ;;  %s778_s5 = inlined_call_operand.vmem [shape: f32[128,128], index: 5, kind: input, shape index: {}]   ;;  %s779_s6 = inlined_call_operand.vmem [shape: f32[1,128], index: 6, kind: input, shape index: {}]   ;;  %s780_s7 = inlined_call_operand.vmem [shape: f32[128,128], index: 7, kind: input, shape index: {}]   ;;  %s781_s8 = inlined_call_operand.vmem [shape: f32[1,128], index: 8, kind: input, shape index: {}]   ;;  %s782_s9 = inlined_call_operand.vmem [shape: f32[16,128], index: 9, kind: output, shape index: {}]  }
   0x1 LB: > { %s536_s10 = sadd.s32 4294967295, %s570_s30   ;;  %p540_p0 = scmp.ge.s32.totalorder %s570_s30, 1  ;;  %s570_s30 = sphi %s623_s30, %s19_s30  }
   0x2   : > { %p286_p1 = scmp.lt.s32.totalorder %s570_s30, 3 }
   0x4   : > { %p287_p2 = pnand %p540_p0, %p286_p1 }
   0x5   : > { %p320_p3 = scmp.lt.s32.totalorder (!%p287_p2), %s536_s10, 1 }
   0x6   : > { %290 = sbr.rel (%p287_p2) target bundleno = 678 (0x2a6), region = 56 }
   0xb   : > { %s784_s10 = smov (!%p320_p3, %s536_s10), 1  ;;  %vm329_vm0 = vcmask 261120   ;;  %v572_v2 = vmov 32.0   ;;  %v372_v14 = vld [vmem:[%s776_s3 + $0x18] sm:$0xff]  ;;  %v371_v15 = vld [vmem:[%s776_s3 + $0x10] sm:$0xff]  ;;  %v370_v16 = vld [vmem:[%s776_s3 + $0x8] sm:$0xff] }
   0xc   : > { %s541_s11 = sshll.u32 %s784_s10, 3  ;;  %560 = vrcp.f32 %v572_v2  ;;  %392 = vmatpush.msra.mxu0 %v372_v14  ;;  %v369_v17 = vld [vmem:[%s776_s3] sm:$0xff]  ;;  %v416_v18 = vld [vmem:[%s778_s5 + $0x78] sm:$0xff]  ;;  %v415_v19 = vld [vmem:[%s778_s5 + $0x70] sm:$0xff] }
   0xd   : > { %s323_s14 = scalar_lea.vmem %s773_s0, %s541_s11  ;;  %421 = vmatpush.msra.mxu1 %v416_v18  ;;  %v414_v20 = vld [vmem:[%s778_s5 + $0x68] sm:$0xff]  ;;  %v413_v23 = vld [vmem:[%s778_s5 + $0x60] sm:$0xff]  ;;  %v412_v25 = vld [vmem:[%s778_s5 + $0x58] sm:$0xff]  ;;  %s327_s27 = scalar_lea.vmem %s782_s9, %s541_s11 }
   0xe   : > { %v328_v0 = vld [vmem:[%s323_s14] sm:$0xff]  ;;  %393 = vmatpush.msra.mxu0 %v371_v15  ;;  %v411_v26 = vld [vmem:[%s778_s5 + $0x50] sm:$0xff]  ;;  %v410_v27 = vld [vmem:[%s778_s5 + $0x48] sm:$0xff] }
   0xf   : > { %v330_v1 = vsel %vm329_vm0, %v328_v0, 0.0  ;;  %422 = vmatpush.msra.mxu1 %v415_v19  ;;  %v409_v28 = vld [vmem:[%s778_s5 + $0x40] sm:$0xff]  ;;  %v408_v30 = vld [vmem:[%s778_s5 + $0x38] sm:$0xff]  ;;  %v407_v32 = vld [vmem:[%s778_s5 + $0x30] sm:$0xff] }
  0x10   : > { %331 = vadd.xlane.f32.xlu0 %v330_v1  ;;  %394 = vmatpush.msra.mxu0 %v370_v16  ;;  %v406_v34 = vld [vmem:[%s778_s5 + $0x28] sm:$0xff]  ;;  %v405_v36 = vld [vmem:[%s778_s5 + $0x20] sm:$0xff]  ;;  %v404_v38 = vld [vmem:[%s778_s5 + $0x18] sm:$0xff] }
  0x11   : > { %423 = vmatpush.msra.mxu1 %v414_v20  ;;  %v555_v40 = vld [vmem:[%s774_s1] ss:$0 sm:$0xff]  ;;  %v403_v46 = vld [vmem:[%s778_s5 + $0x10] sm:$0xff]  ;;  %v402_v47 = vld [vmem:[%s778_s5 + $0x8] sm:$0xff] }
  0x12   : > { %v561_v3 = vpop.eup %560  ;;  %395 = vmatpush.msra.mxu0 %v369_v17  ;;  %v556_v43 = vld [vmem:[%s775_s2] ss:$0 sm:$0xff]  ;;  %v457_v49 = vld [vmem:[%s780_s7 + $0x78] sm:$0xff]  ;;  %v456_v50 = vld [vmem:[%s780_s7 + $0x70] sm:$0xff] }
  0x13   : > { %v334_v4 = vmul.f32 32.0, %v561_v3  ;;  %vm338_vm1 = vweird.f32 %v561_v3  ;;  %424 = vmatpush.msra.mxu1 %v413_v23  ;;  %v401_v48 = vld [vmem:[%s778_s5] sm:$0xff]  ;;  %462 = vmatpush.msra.mxu2 %v457_v49  ;;  %v455_v51 = vld [vmem:[%s780_s7 + $0x68] sm:$0xff]  ;;  %v453_v53 = vld [vmem:[%s780_s7 + $0x58] sm:$0xff] }
  0x14   : > { %v454_v52 = vld [vmem:[%s780_s7 + $0x60] sm:$0xff]  ;;  %v452_v54 = vld [vmem:[%s780_s7 + $0x50] sm:$0xff]  ;;  %v451_v55 = vld [vmem:[%s780_s7 + $0x48] sm:$0xff] }
  0x15   : > { %v335_v5 = vsub.f32 1.0, %v334_v4  ;;  %425 = vmatpush.msra.mxu1 %v412_v25  ;;  %463 = vmatpush.msra.mxu2 %v456_v50  ;;  %v450_v56 = vld [vmem:[%s780_s7 + $0x40] sm:$0xff]  ;;  %v449_v57 = vld [vmem:[%s780_s7 + $0x38] sm:$0xff]  ;;  %v448_v58 = vld [vmem:[%s780_s7 + $0x30] sm:$0xff] }
  0x16   : > { %v447_v59 = vld [vmem:[%s780_s7 + $0x28] sm:$0xff]  ;;  %v446_v60 = vld [vmem:[%s780_s7 + $0x20] sm:$0xff]  ;;  %v445_v61 = vld [vmem:[%s780_s7 + $0x18] sm:$0xff] }
  0x17   : > { %v336_v6 = vmul.f32 %v561_v3, %v335_v5  ;;  %426 = vmatpush.msra.mxu1 %v411_v26  ;;  %464 = vmatpush.msra.mxu2 %v455_v51  ;;  %v557_v62 = vld [vmem:[%s777_s4] ss:$0 sm:$0xff]  ;;  %v444_v2 = vld [vmem:[%s780_s7 + $0x10] sm:$0xff] }
  0x18   : > { %v442_v4 = vld [vmem:[%s780_s7] sm:$0xff] }
  0x19   : > { %v337_v7 = vadd.f32 %v561_v3, %v336_v6  ;;  %427 = vmatpush.msra.mxu1 %v410_v27  ;;  %465 = vmatpush.msra.mxu2 %v454_v52  ;;  %v558_v5 = vld [vmem:[%s779_s6] ss:$0 sm:$0xff] }
  0x1b   : > { %v339_v8 = vsel %vm338_vm1, %v561_v3, %v337_v7  ;;  %428 = vmatpush.msra.mxu1 %v409_v28  ;;  %466 = vmatpush.msra.mxu2 %v453_v53  ;;  %v443_v3 = vld [vmem:[%s780_s7 + $0x8] sm:$0xff] }
  0x1d   : > { %429 = vmatpush.msra.mxu1 %v408_v30  ;;  %467 = vmatpush.msra.mxu2 %v452_v54 }
  0x1f   : > { %430 = vmatpush.msra.mxu1 %v407_v32  ;;  %468 = vmatpush.msra.mxu2 %v451_v55 }
  0x21   : > { %431 = vmatpush.msra.mxu1 %v406_v34  ;;  %469 = vmatpush.msra.mxu2 %v450_v56 }
  0x23   : > { %432 = vmatpush.msra.mxu1 %v405_v36  ;;  %470 = vmatpush.msra.mxu2 %v449_v57 }
  0x25   : > { %433 = vmatpush.msra.mxu1 %v404_v38  ;;  %471 = vmatpush.msra.mxu2 %v448_v58 }
  0x27   : > { %434 = vmatpush.msra.mxu1 %v403_v46  ;;  %472 = vmatpush.msra.mxu2 %v447_v59 }
  0x29   : > { %435 = vmatpush.msra.mxu1 %v402_v47  ;;  %473 = vmatpush.msra.mxu2 %v446_v60 }
  0x2b   : > { %436 = vmatpush.msra.mxu1 %v401_v48  ;;  %474 = vmatpush.msra.mxu2 %v445_v61 }
  0x2d   : > { %475 = vmatpush.msra.mxu2 %v444_v2 }
  0x2f   : > { %476 = vmatpush.msra.mxu2 %v443_v3 }
  0x31   : > { %477 = vmatpush.msra.mxu2 %v442_v4 }
  0x83   : > { %v332_v9 = vpop.xlane.xlu0 %331 }
  0x84   : > { %v340_v10 = vmul.f32 %v339_v8, %v332_v9  ;;  %v559_v9 = vld [vmem:[%s781_s8] ss:$0 sm:$0xff] }
  0x86   : > { %v341_v11 = vsub.f32 %v328_v0, %v340_v10 }
  0x88   : > { %v342_v12 = vmul.f32 %v341_v11, %v341_v11 }
  0x8a   : > { %v343_v13 = vsel %vm329_vm0, %v342_v12, 0.0 }
  0x8b   : > { %344 = vadd.xlane.f32.xlu0 %v343_v13 }
  0xfe   : > { %v345_v21 = vpop.xlane.xlu0 %344 }
  0xff   : > { %v346_v22 = vmul.f32 %v345_v21, %v339_v8 }
 0x101   : > { %v347_v24 = vadd.f32 1e-05, %v346_v22 }
 0x103   : > { %562 = vrsqrt.f32 %v347_v24  ;;  %vm354_vm3 = vweird.f32 %v347_v24 }
 0x109   : > { %v563_v29 = vpop.eup %562 }
 0x10a   : > { %v349_v31 = vmul.f32 %v563_v29, %v347_v24  ;;  %vm355_vm2 = vweird.f32 %v563_v29 }
 0x10b   : > { %vm356_vm4 = vmor %vm354_vm3, %vm355_vm2 }
 0x10c   : > { %v350_v33 = vmul.f32 %v563_v29, %v349_v31 }
 0x10e   : > { %v351_v35 = vmul.f32 0.5, %v350_v33 }
 0x110   : > { %v352_v37 = vsub.f32 1.5, %v351_v35 }
 0x112   : > { %v353_v39 = vmul.f32 %v563_v29, %v352_v37 }
 0x114   : > { %v357_v41 = vsel %vm356_vm4, %v563_v29, %v353_v39 }
 0x115   : > { %v358_v42 = vmul.f32 %v357_v41, %v341_v11 }
 0x117   : > { %v363_v44 = vmul.f32 %v555_v40, %v358_v42 }
 0x119   : > { %v368_v45 = vadd.f32 %v556_v43, %v363_v44 }
 0x11b   : > { %543 = vmatmul.msk.f32.vlgmr.msra.gmra.mxu0 %vm329_vm0, %v368_v45 }
 0x198   : > { %v397_v63 = vpop.f32.mrf.mxu0 }
 0x199   : > { %v398_v0 = vadd.f32 %v557_v62, %v397_v63 }
 0x19b   : > { %v400_v1 = vmax.f32 %v398_v0, 0.0 }
 0x19d   : > { %437 = vmatmul.f32.vlgmr.msra.gmra.mxu1 %v400_v1 }
 0x21a   : > { %v438_v6 = vpop.f32.mrf.mxu1 }
 0x21b   : > { %v439_v7 = vadd.f32 %v558_v5, %v438_v6 }
 0x21d   : > { %v441_v8 = vmax.f32 %v439_v7, 0.0 }
 0x21f   : > { %478 = vmatmul.f32.vlgmr.msra.gmra.mxu2 %v441_v8 }
 0x2a2   : > { %v479_v10 = vpop.f32.mrf.mxu2 }
 0x2a3   : > { %v480_v11 = vadd.f32 %v559_v9, %v479_v10 }
 0x2a5   : > { %482 = vst [vmem:[%s327_s27] sm:$0xff] %v480_v11 }
 0x2a6 PF: > { %s19_s30 = sadd.s32 1, %s570_s30  }
 0x2a7   : > { %p16_p4 = scmp.ge.s32.totalorder %s19_s30, 4  }
 0x2a9   :  { %18 = sbr.rel (!%p16_p4) target bundleno = 1 (0x1), region = 86 }

</bundles_post_ra>
